<compile_context>
chip_gen: v5e
topology: v5e:2x2
jax: 0.10.0
libtpu: 0.0.40
codegen_flags: <defaults>
</compile_context>

<pallas_src>
from typing import NamedTuple

import jax
import jax.numpy as jnp
from jax.experimental import pallas as pl
from jax.experimental.pallas import tpu as pltpu


def _round_up(x, m):
    return (x + m - 1) // m * m


class TilePlan(NamedTuple):
    B: int
    D_pix: int
    F_dim: int
    O_dim: int
    tm: int
    Bp: int
    tk: int
    Kp: int
    Fp: int
    Op: int


def _make_plan(B, D_pix, F_dim, O_dim, *, tm_target=256, tk_target=3072):
    """Static tiling plan (host-side Python ints only)."""
    # Batch tiling: bf16 sublane packing is 16 rows.  Prefer >=2 batch tiles
    # when the batch permits so both v7x TensorCores get work on the
    # "parallel" grid axis.
    B16 = _round_up(B, 16)
    tm = min(_round_up(tm_target, 16), B16)
    if B16 // tm < 2 and B16 >= 32:
        tm = _round_up(-(-B16 // 2), 16)
    Bp = _round_up(B16, tm)

    # Contraction (pixel) tiling: big K tiles -> fewer grid steps, fatter DMAs.
    # Pick the largest tk <= tk_target (multiple of 128) that divides the
    # 128-aligned D_pix so pixels usually need no padding pass at all
    # (e.g. 3*224*224 = 150528 is divisible by 3072).
    Kp = _round_up(D_pix, 128)
    cap = max(128, (min(tk_target, Kp) // 128) * 128)
    tk = next((c for c in range(cap, 127, -128) if Kp % c == 0), 128)
    if tk * 4 < cap:  # only tiny divisors exist -> accept one small pad pass
        tk = cap
        Kp = _round_up(Kp, tk)

    # Feature / output lanes: 256-granule feature dim matches the v6e/v7x
    # 256x256 MXU; outputs lane-dense (>=128) so stores are unmasked.
    Fp = _round_up(F_dim, 256 if F_dim > 128 else 128)
    Op = _round_up(O_dim, 128)
    return TilePlan(B, D_pix, F_dim, O_dim, tm, Bp, tk, Kp, Fp, Op)


def prepare_frozen_weight(w_clip, plan: TilePlan):
    """One-time: cast the frozen backbone weight to bf16 and pad to the
    kernel's (Kp, Fp) tile grid.  Cache the result; do NOT call per-forward."""
    D_pix, F_dim = w_clip.shape
    wc = w_clip.astype(jnp.bfloat16)
    if plan.Kp != D_pix or plan.Fp != F_dim:
        wc = jnp.pad(wc, ((0, plan.Kp - D_pix), (0, plan.Fp - F_dim)))
    return wc


def prepare_head(w_lin, b_lin, plan: TilePlan):
    """Pad the (tiny) trainable head to lane-dense f32 tiles."""
    w = w_lin.astype(jnp.float32)
    b = jnp.reshape(b_lin, (1, -1)).astype(jnp.float32)
    w = jnp.pad(w, ((0, plan.Fp - w.shape[0]), (0, plan.Op - w.shape[1])))
    b = jnp.pad(b, ((0, 0), (0, plan.Op - b.shape[1])))
    return w, b


def _embed_kernel(px_ref, wclip_ref, wlin_ref, b_ref, out_ref, acc_ref):
    """Grid = (batch tiles, K tiles); K (pixel contraction) is last/'arbitrary'.
    acc_ref: f32 [tm, Fp] accumulator carried across the K axis."""
    k = pl.program_id(1)

    @pl.when(k == 0)
    def _():
        acc_ref[...] = jnp.zeros_like(acc_ref)

    # Frozen "CLIP" projection tile: bf16 x bf16 -> f32 accumulate on the MXU.
    # The cast is a no-op when the wrapper already produced a bf16 (padded)
    # pixel tensor; otherwise it is a cheap VPU op on an HBM-bound stream.
    a = px_ref[...].astype(jnp.bfloat16)
    acc_ref[...] += jnp.dot(a, wclip_ref[...],
                            preferred_element_type=jnp.float32)

    # Finalize: trainable linear head + bias + L2 normalize (fused epilogue).
    @pl.when(k == pl.num_programs(1) - 1)
    def _():
        feats = acc_ref[...]
        y = jnp.dot(feats, wlin_ref[...],
                    preferred_element_type=jnp.float32) + b_ref[...]
        # F.normalize(y, p=2, dim=-1) == y / max(||y||, eps)
        #                             == y * rsqrt(max(sum(y^2), eps^2))
        # (padded O lanes have zero weight+bias -> contribute 0 to the norm)
        sumsq = jnp.sum(y * y, axis=-1, keepdims=True)
        inv = jax.lax.rsqrt(jnp.maximum(sumsq, jnp.float32(1e-24)))
        out_ref[...] = (y * inv).astype(out_ref.dtype)


def _vmem_limit_bytes(plan: TilePlan, px_itemsize: int) -> int:
    """Actual double-buffered working set + headroom (v7x VMEM is 64 MiB)."""
    working = (2 * plan.tm * plan.tk * px_itemsize      # pixel tiles
               + 2 * plan.tk * plan.Fp * 2              # w_clip tiles (bf16)
               + 2 * plan.Fp * plan.Op * 4              # resident w_lin
               + 2 * plan.Op * 4                        # resident bias
               + 2 * plan.tm * plan.Op * 4              # output tiles
               + plan.tm * plan.Fp * 4)                 # f32 accumulator
    return max(working + (4 << 20), 16 << 20)


def image_embedding_forward(pixel_values, w_clip_p, w_lin_p, b_lin_p,
                            plan: TilePlan):
    """pixel_values: [B, C, H, W] float32 (NCHW).
       w_clip_p: [Kp, Fp] bf16 (prepared once via prepare_frozen_weight).
       w_lin_p:  [Fp, Op] f32, b_lin_p: [1, Op] f32 (prepare_head).
       returns: [B, O_dim] f32 L2-normalized embeddings."""
    B, C, H, W = pixel_values.shape
    D_pix = C * H * W
    assert (B, D_pix) == (plan.B, plan.D_pix)
    assert w_clip_p.shape == (plan.Kp, plan.Fp)
    assert w_lin_p.shape == (plan.Fp, plan.Op)

    # Flatten NCHW (metadata-only for contiguous input).  Pixels are streamed
    # to the kernel untouched when already tile-aligned; otherwise the single
    # unavoidable pad pass is fused with a bf16 cast so the kernel re-reads
    # half the bytes.  Zero padding is exact: padded pixels / contraction rows
    # add 0 to the accumulator, padded output columns add 0 to the L2 norm,
    # padded batch rows are sliced off below.
    px = pixel_values.reshape(B, D_pix)
    if plan.Bp != B or plan.Kp != D_pix:
        px = jnp.pad(px.astype(jnp.bfloat16),
                     ((0, plan.Bp - B), (0, plan.Kp - D_pix)))

    grid = (plan.Bp // plan.tm, plan.Kp // plan.tk)
    n_batch_tiles = grid[0]

    cost = pl.CostEstimate(
        flops=2 * plan.Bp * plan.Kp * plan.Fp + 2 * plan.Bp * plan.Fp * plan.Op,
        transcendentals=plan.Bp,
        bytes_accessed=(px.size * px.dtype.itemsize
                        + n_batch_tiles * w_clip_p.size * 2   # re-streamed per batch tile
                        + w_lin_p.size * 4 + b_lin_p.size * 4
                        + plan.Bp * plan.Op * 4),
    )

    out = pl.pallas_call(
        _embed_kernel,
        out_shape=jax.ShapeDtypeStruct((plan.Bp, plan.Op), jnp.float32),
        grid_spec=pltpu.PrefetchScalarGridSpec(
            num_scalar_prefetch=0,
            grid=grid,
            in_specs=[
                pl.BlockSpec((plan.tm, plan.tk), lambda i, k: (i, k)),  # pixels
                pl.BlockSpec((plan.tk, plan.Fp), lambda i, k: (k, 0)),  # w_clip
                pl.BlockSpec((plan.Fp, plan.Op), lambda i, k: (0, 0)),  # w_lin
                pl.BlockSpec((1, plan.Op), lambda i, k: (0, 0)),        # bias
            ],
            out_specs=pl.BlockSpec((plan.tm, plan.Op), lambda i, k: (i, 0)),
            scratch_shapes=[pltpu.VMEM((plan.tm, plan.Fp), jnp.float32)],
        ),
        compiler_params=pltpu.CompilerParams(
            dimension_semantics=("parallel", "arbitrary"),
            vmem_limit_bytes=_vmem_limit_bytes(plan, px.dtype.itemsize),
        ),
        cost_estimate=cost,
    )(px, w_clip_p, w_lin_p, b_lin_p)

    return out[:B, :plan.O_dim]


def _reference_forward(pixel_values, w_clip, w_lin, b_lin):
    """Pure-JAX reference with the same bf16 cast on the frozen projection."""
    B = pixel_values.shape[0]
    px = pixel_values.reshape(B, -1).astype(jnp.bfloat16)
    feats = jnp.dot(px, w_clip.astype(jnp.bfloat16),
                    preferred_element_type=jnp.float32)
    y = jnp.dot(feats, w_lin.astype(jnp.float32),
                preferred_element_type=jnp.float32) + b_lin.reshape(1, -1)
    n = jnp.sqrt(jnp.sum(y * y, axis=-1, keepdims=True))
    return y / jnp.maximum(n, 1e-12)


if __name__ == "__main__":
    # Small, deterministic shapes consistent with the module:
    B, C, H, W = 2, 3, 16, 16      # NCHW pixel input (CLIP-style 3 channels)
    FEAT = 32                      # stand-in CLIP image-feature dim (input_dim)
    OUT = 16                       # output_dim of nn.Linear

    key = jax.random.PRNGKey(0)
    k_px, k_clip, k_w, k_b = jax.random.split(key, 4)

    pixel_values = jax.random.normal(k_px, (B, C, H, W), dtype=jnp.float32)

    # Frozen backbone stand-in weights.
    w_clip = (jax.random.normal(k_clip, (C * H * W, FEAT), dtype=jnp.float32)
              / jnp.sqrt(jnp.float32(C * H * W)))

    # nn.Linear(input_dim=FEAT, output_dim=OUT) init: U(-1/sqrt(in), 1/sqrt(in)).
    bound = 1.0 / jnp.sqrt(jnp.float32(FEAT))
    w_lin = jax.random.uniform(k_w, (FEAT, OUT), dtype=jnp.float32,
                               minval=-bound, maxval=bound)
    b_lin = jax.random.uniform(k_b, (1, OUT), dtype=jnp.float32,
                               minval=-bound, maxval=bound)

    # One-time preparation (frozen backbone weight + tiny head), cached outside
    # the per-forward path.
    plan = _make_plan(B, C * H * W, FEAT, OUT)
    w_clip_p = prepare_frozen_weight(w_clip, plan)
    w_lin_p, b_lin_p = prepare_head(w_lin, b_lin, plan)

    fwd = jax.jit(image_embedding_forward, static_argnums=(4,))
    out = fwd(pixel_values, w_clip_p, w_lin_p, b_lin_p, plan)
    out = jax.block_until_ready(out)

    ref = _reference_forward(pixel_values, w_clip, w_lin, b_lin)
    assert out.shape == (B, OUT)
    assert jnp.allclose(out, ref, atol=2e-4, rtol=2e-4), "mismatch vs reference"

    print("KERNEL_OK")
</pallas_src>

<mosaic_0001>
module attributes {stable_mosaic.version = 11 : i64} {
  func.func @_embed_kernel(%arg0: i32, %arg1: i32, %arg2: memref<16x768xbf16, #tpu.memory_space<vmem>>, %arg3: memref<768x128xbf16, #tpu.memory_space<vmem>>, %arg4: memref<128x128xf32, #tpu.memory_space<vmem>>, %arg5: memref<1x128xf32, #tpu.memory_space<vmem>>, %arg6: memref<16x128xf32, #tpu.memory_space<vmem>>, %arg7: memref<16x128xf32, #tpu.memory_space<vmem>>) attributes {dimension_semantics = [#tpu.dimension_semantics<parallel>, #tpu.dimension_semantics<arbitrary>], iteration_bounds = array<i64: 1, 1>, scalar_prefetch = 0 : i64, scratch_operands = 1 : i64, tpu.core_type = #tpu.core_type<tc>, window_params = [{transform_indices = @transform_0, window_bounds = array<i64: 16, 768>}, {transform_indices = @transform_1, window_bounds = array<i64: 768, 128>}, {pipeline_mode = #tpu.pipeline_mode<synchronous>, transform_indices = @transform_2, window_bounds = array<i64: 128, 128>}, {pipeline_mode = #tpu.pipeline_mode<synchronous>, transform_indices = @transform_3, window_bounds = array<i64: 1, 128>}, {transform_indices = @transform_4, window_bounds = array<i64: 16, 128>}]} {
    %c0_i32 = arith.constant 0 : i32
    %0 = arith.cmpi eq, %arg1, %c0_i32 : i32
    %1 = arith.extui %0 : i1 to i32
    %c0_i32_0 = arith.constant 0 : i32
    %2 = arith.cmpi ne, %1, %c0_i32_0 : i32
    scf.if %2 {
      %cst_10 = arith.constant 0.000000e+00 : f32
      %12 = vector.broadcast %cst_10 : f32 to vector<16x128xf32>
      %c0_11 = arith.constant 0 : index
      %c0_12 = arith.constant 0 : index
      %13 = vector.load %arg7[%c0_11, %c0_12] : memref<16x128xf32, #tpu.memory_space<vmem>>, vector<16x128xf32>
      tpu.vector_store %arg7[%c0_11, %c0_12], %12 {strides = array<i32>} : memref<16x128xf32, #tpu.memory_space<vmem>>, vector<16x128xf32>,
    } else {
    }
    %c0 = arith.constant 0 : index
    %c0_1 = arith.constant 0 : index
    %3 = vector.load %arg2[%c0, %c0_1] : memref<16x768xbf16, #tpu.memory_space<vmem>>, vector<16x768xbf16>
    %c0_2 = arith.constant 0 : index
    %c0_3 = arith.constant 0 : index
    %4 = vector.load %arg7[%c0_2, %c0_3] : memref<16x128xf32, #tpu.memory_space<vmem>>, vector<16x128xf32>
    %c0_4 = arith.constant 0 : index
    %c0_5 = arith.constant 0 : index
    %5 = vector.load %arg3[%c0_4, %c0_5] : memref<768x128xbf16, #tpu.memory_space<vmem>>, vector<768x128xbf16>
    %cst = arith.constant dense<0.000000e+00> : vector<16x128xf32>
    %6 = tpu.matmul %3, %5, %cst {dimension_numbers = #tpu.dot_dimension_numbers<[1], [0], [0], [1], [0, 0, 1, 1], [], []>} : vector<16x768xbf16>, vector<768x128xbf16>, vector<16x128xf32> -> vector<16x128xf32>
    %7 = arith.addf %4, %6 : vector<16x128xf32>
    %c0_6 = arith.constant 0 : index
    %c0_7 = arith.constant 0 : index
    %8 = vector.load %arg7[%c0_6, %c0_7] : memref<16x128xf32, #tpu.memory_space<vmem>>, vector<16x128xf32>
    tpu.vector_store %arg7[%c0_6, %c0_7], %7 {strides = array<i32>} : memref<16x128xf32, #tpu.memory_space<vmem>>, vector<16x128xf32>,
    %c0_i32_8 = arith.constant 0 : i32
    %9 = arith.cmpi eq, %arg1, %c0_i32_8 : i32
    %10 = arith.extui %9 : i1 to i32
    %c0_i32_9 = arith.constant 0 : i32
    %11 = arith.cmpi ne, %10, %c0_i32_9 : i32
    scf.if %11 {
      %c0_10 = arith.constant 0 : index
      %c0_11 = arith.constant 0 : index
      %12 = vector.load %arg7[%c0_10, %c0_11] : memref<16x128xf32, #tpu.memory_space<vmem>>, vector<16x128xf32>
      %c0_12 = arith.constant 0 : index
      %c0_13 = arith.constant 0 : index
      %13 = vector.load %arg4[%c0_12, %c0_13] : memref<128x128xf32, #tpu.memory_space<vmem>>, vector<128x128xf32>
      %cst_14 = arith.constant dense<0.000000e+00> : vector<16x128xf32>
      %14 = tpu.matmul %12, %13, %cst_14 {dimension_numbers = #tpu.dot_dimension_numbers<[1], [0], [0], [1], [0, 0, 1, 1], [], []>} : vector<16x128xf32>, vector<128x128xf32>, vector<16x128xf32> -> vector<16x128xf32>
      %c0_15 = arith.constant 0 : index
      %c0_16 = arith.constant 0 : index
      %15 = vector.load %arg5[%c0_15, %c0_16] : memref<1x128xf32, #tpu.memory_space<vmem>>, vector<1x128xf32>
      %16 = vector.broadcast %15 : vector<1x128xf32> to vector<16x128xf32>
      %17 = arith.addf %14, %16 : vector<16x128xf32>
      %18 = arith.mulf %17, %17 : vector<16x128xf32>
      %cst_17 = arith.constant dense<0.000000e+00> : vector<16xf32>
      %19 = vector.multi_reduction <add>, %18, %cst_17 [1] : vector<16x128xf32> to vector<16xf32>
      %20 = vector.shape_cast %19 : vector<16xf32> to vector<16x1xf32>
      %cst_18 = arith.constant 1.000000e-24 : f32
      %21 = vector.broadcast %cst_18 : f32 to vector<16x1xf32>
      %22 = arith.maximumf %20, %21 : vector<16x1xf32>
      %23 = math.rsqrt %22 : vector<16x1xf32>
      %24 = vector.broadcast %23 : vector<16x1xf32> to vector<16x128xf32>
      %25 = arith.mulf %17, %24 : vector<16x128xf32>
      %c0_19 = arith.constant 0 : index
      %c0_20 = arith.constant 0 : index
      %26 = vector.load %arg6[%c0_19, %c0_20] : memref<16x128xf32, #tpu.memory_space<vmem>>, vector<16x128xf32>
      tpu.vector_store %arg6[%c0_19, %c0_20], %25 {strides = array<i32>} : memref<16x128xf32, #tpu.memory_space<vmem>>, vector<16x128xf32>,
    } else {
    }
    return
  }
  func.func @transform_0(%arg0: i32, %arg1: i32) -> (i32, i32) {
    %c0_i32 = arith.constant 0 : i32
    return %arg0, %arg1 : i32, i32
  }
  func.func @transform_1(%arg0: i32, %arg1: i32) -> (i32, i32) {
    %c0_i32 = arith.constant 0 : i32
    %c0_i32_0 = arith.constant 0 : i32
    return %arg1, %c0_i32 : i32, i32
  }
  func.func @transform_2(%arg0: i32, %arg1: i32) -> (i32, i32) {
    %c0_i32 = arith.constant 0 : i32
    %c0_i32_0 = arith.constant 0 : i32
    %c0_i32_1 = arith.constant 0 : i32
    return %c0_i32, %c0_i32_0 : i32, i32
  }
  func.func @transform_3(%arg0: i32, %arg1: i32) -> (i32, i32) {
    %c0_i32 = arith.constant 0 : i32
    %c0_i32_0 = arith.constant 0 : i32
    %c0_i32_1 = arith.constant 0 : i32
    return %c0_i32, %c0_i32_0 : i32, i32
  }
  func.func @transform_4(%arg0: i32, %arg1: i32) -> (i32, i32) {
    %c0_i32 = arith.constant 0 : i32
    %c0_i32_0 = arith.constant 0 : i32
    return %arg0, %c0_i32 : i32, i32
  }
}

</mosaic_0001>

<bundles_post_ra>
// kernel: image_embedding_forward.1
= control target key start
LH: loop header
LB: loop body
LE: loop exit
PB: predicated region body
PF: predicated region fallthrough
CT: control target
= control target key end

     0   :  { %9 = vsyncpa [#allocation4], 0  ;;  %s938_s18 = smov [#allocation3]   ;;  %s939_s20 = smov 64   ;;  %s1062_s0 = inlined_call_operand.vmem [shape: bf16[16,768], index: 0, kind: input, shape index: {}]   ;;  %s1063_s1 = inlined_call_operand.hbm [shape: bf16[768,128], index: 1, kind: input, shape index: {}]   ;;  %s1064_s2 = inlined_call_operand.vmem [shape: f32[128,128], index: 2, kind: input, shape index: {}]   ;;  %s1065_s3 = inlined_call_operand.vmem [shape: f32[1,128], index: 3, kind: input, shape index: {}]   ;;  %s1066_s4 = inlined_call_operand.vmem [shape: f32[16,128], index: 4, kind: output, shape index: {}]  }
   0x1   :  { %s16_s17 = sshll.u32 %s1063_s1, 4  ;;  %s18_s19 = sshll.u32 %s938_s18, 4  ;;  %s17_s17 = int_to_ptr.hbm [resolvable:$true] %s16_s17  ;;  %s19_s19 = int_to_ptr.vmem [resolvable:$true] %s18_s19 }
   0x2   :  { %s940_s21 = smov 4  }
   0x3   :  { %24 = dma.hbm_to_vmem [thread:$0]  %s17_s17, 6144, %s19_s19, [#allocation4], %s939_s20, %s939_s20, %s940_s21  }
   0x4   :  { %936 = dma.done.wait [#allocation4], 6144  }
   0x5   :  { %937 = vsyncadd [#allocation4], 4294961152  ;;  %v863_v0 = vld [vmem:[#allocation3 + $0x38] sm:$0xff]  ;;  %v862_v4 = vld [vmem:[#allocation3 + $0x30] sm:$0xff] }
   0x6   :  { %v871_v1 = vld [vmem:[#allocation3 + $0x78] sm:$0xff]  ;;  %461 = vmatpush.bf16.msra.mxu0 %v863_v0  ;;  %v870_v5 = vld [vmem:[#allocation3 + $0x70] sm:$0xff]  ;;  %v861_v8 = vld [vmem:[#allocation3 + $0x28] sm:$0xff] }
   0x7   :  { %v879_v2 = vld [vmem:[#allocation3 + $0xb8] sm:$0xff]  ;;  %475 = vmatpush.bf16.msra.mxu1 %v871_v1  ;;  %v878_v6 = vld [vmem:[#allocation3 + $0xb0] sm:$0xff]  ;;  %v869_v9 = vld [vmem:[#allocation3 + $0x68] sm:$0xff] }
   0x8   :  { %v887_v3 = vld [vmem:[#allocation3 + $0xf8] sm:$0xff]  ;;  %489 = vmatpush.bf16.msra.mxu2 %v879_v2  ;;  %v886_v7 = vld [vmem:[#allocation3 + $0xf0] sm:$0xff]  ;;  %v877_v10 = vld [vmem:[#allocation3 + $0xa8] sm:$0xff] }
   0x9   :  { %503 = vmatpush.bf16.msra.mxu3 %v887_v3  ;;  %v885_v11 = vld [vmem:[#allocation3 + $0xe8] sm:$0xff]  ;;  %v860_v12 = vld [vmem:[#allocation3 + $0x20] sm:$0xff]  ;;  %v859_v16 = vld [vmem:[#allocation3 + $0x18] sm:$0xff] }
   0xa   :  { %462 = vmatpush.bf16.msra.mxu0 %v862_v4  ;;  %v868_v13 = vld [vmem:[#allocation3 + $0x60] sm:$0xff]  ;;  %v867_v17 = vld [vmem:[#allocation3 + $0x58] sm:$0xff]  ;;  %v858_v20 = vld [vmem:[#allocation3 + $0x10] sm:$0xff] }
   0xb   :  { %476 = vmatpush.bf16.msra.mxu1 %v870_v5  ;;  %v876_v14 = vld [vmem:[#allocation3 + $0xa0] sm:$0xff]  ;;  %v875_v18 = vld [vmem:[#allocation3 + $0x98] sm:$0xff]  ;;  %v866_v21 = vld [vmem:[#allocation3 + $0x50] sm:$0xff] }
   0xc   :  { %490 = vmatpush.bf16.msra.mxu2 %v878_v6  ;;  %v884_v15 = vld [vmem:[#allocation3 + $0xe0] sm:$0xff]  ;;  %v883_v19 = vld [vmem:[#allocation3 + $0xd8] sm:$0xff]  ;;  %v874_v22 = vld [vmem:[#allocation3 + $0x90] sm:$0xff] }
   0xd   :  { %504 = vmatpush.bf16.msra.mxu3 %v886_v7  ;;  %v882_v23 = vld [vmem:[#allocation3 + $0xd0] sm:$0xff]  ;;  %v857_v24 = vld [vmem:[#allocation3 + $0x8] sm:$0xff]  ;;  %v856_v28 = vld [vmem:[#allocation3] sm:$0xff] }
   0xe   :  { %463 = vmatpush.bf16.msra.mxu0 %v861_v8  ;;  %v865_v25 = vld [vmem:[#allocation3 + $0x48] sm:$0xff]  ;;  %v864_v29 = vld [vmem:[#allocation3 + $0x40] sm:$0xff]  ;;  %v895_v31 = vld [vmem:[#allocation3 + $0x138] sm:$0xff] }
   0xf   :  { %477 = vmatpush.bf16.msra.mxu1 %v869_v9  ;;  %v873_v26 = vld [vmem:[#allocation3 + $0x88] sm:$0xff]  ;;  %v872_v30 = vld [vmem:[#allocation3 + $0x80] sm:$0xff]  ;;  %v853_v33 = vld [vmem:[%s1062_s0 + $0x14] sm:$0xf0] }
  0x10   :  { %491 = vmatpush.bf16.msra.mxu2 %v877_v10  ;;  %v881_v27 = vld [vmem:[#allocation3 + $0xc8] sm:$0xff]  ;;  %v636_v32 = vld [vmem:[%s1062_s0] sm:$0xf]  ;;  %v850_v34 = vld [vmem:[%s1062_s0 + $0x4] sm:$0xf] }
  0x11   :  { %505 = vmatpush.bf16.msra.mxu3 %v885_v11  ;;  %v638_v35 = vld [vmem:[%s1062_s0 + $0x18] sm:$0xf0]  ;;  %v644_v37 = vld [vmem:[%s1062_s0 + $0x8] sm:$0xf]  ;;  %v854_v38 = vld [vmem:[%s1062_s0 + $0x1c] sm:$0xf0]  ;;  %v637_v42 = vor.u32 %v853_v33, %v636_v32 }
  0x12   :  { %464 = vmatpush.bf16.msra.mxu0 %v860_v12  ;;  %v903_v36 = vld [vmem:[#allocation3 + $0x178] sm:$0xff]  ;;  %v880_v39 = vld [vmem:[#allocation3 + $0xc0] sm:$0xff]  ;;  %v851_v40 = vld [vmem:[%s1062_s0 + $0xc] sm:$0xf]  ;;  %v641_v43 = vor.u32 %v850_v34, %v638_v35  ;;  %v645_v44 = vor.u32 %v854_v38, %v644_v37 }
  0x13   :  { %478 = vmatpush.bf16.msra.mxu1 %v868_v13  ;;  %v646_v41 = vld [vmem:[%s1062_s0 + $0x20] sm:$0xf0]  ;;  %v894_v45 = vld [vmem:[#allocation3 + $0x130] sm:$0xff]  ;;  %v569_v48 = vld [vmem:[%s1064_s2 + $0x78] sm:$0xff] }
  0x14   :  { %492 = vmatpush.bf16.msra.mxu2 %v876_v14  ;;  %v649_v46 = vor.u32 %v851_v40, %v646_v41  ;;  %v902_v47 = vld [vmem:[#allocation3 + $0x170] sm:$0xff]  ;;  %v893_v49 = vld [vmem:[#allocation3 + $0x128] sm:$0xff]  ;;  %v892_v51 = vld [vmem:[#allocation3 + $0x120] sm:$0xff] }
  0x15   :  { %506 = vmatpush.bf16.msra.mxu3 %v884_v15  ;;  %v901_v50 = vld [vmem:[#allocation3 + $0x168] sm:$0xff]  ;;  %v900_v52 = vld [vmem:[#allocation3 + $0x160] sm:$0xff]  ;;  %v891_v53 = vld [vmem:[#allocation3 + $0x118] sm:$0xff] }
  0x16   :  { %465 = vmatpush.bf16.msra.mxu0 %v859_v16  ;;  %v899_v54 = vld [vmem:[#allocation3 + $0x158] sm:$0xff]  ;;  %v890_v55 = vld [vmem:[#allocation3 + $0x110] sm:$0xff]  ;;  %v889_v57 = vld [vmem:[#allocation3 + $0x108] sm:$0xff] }
  0x17   :  { %479 = vmatpush.bf16.msra.mxu1 %v867_v17  ;;  %v898_v56 = vld [vmem:[#allocation3 + $0x150] sm:$0xff]  ;;  %v897_v58 = vld [vmem:[#allocation3 + $0x148] sm:$0xff]  ;;  %v888_v59 = vld [vmem:[#allocation3 + $0x100] sm:$0xff] }
  0x18   :  { %493 = vmatpush.bf16.msra.mxu2 %v875_v18  ;;  %v652_v60 = vld [vmem:[%s1062_s0 + $0x10] sm:$0xf]  ;;  %v855_v61 = vld [vmem:[%s1062_s0 + $0x24] sm:$0xf0]  ;;  %v896_v62 = vld [vmem:[#allocation3 + $0x140] sm:$0xff] }
  0x19   :  { %507 = vmatpush.bf16.msra.mxu3 %v883_v19  ;;  %v852_v63 = vld [vmem:[%s1062_s0 + $0x14] sm:$0xf]  ;;  %v654_v0 = vld [vmem:[%s1062_s0 + $0x28] sm:$0xf0]  ;;  %v653_v1 = vor.u32 %v855_v61, %v652_v60  ;;  %v566_v5 = vld [vmem:[%s1064_s2 + $0x60] sm:$0xff] }
  0x1a   :  { %466 = vmatpush.bf16.msra.mxu0 %v858_v20  ;;  %v657_v2 = vor.u32 %v852_v63, %v654_v0  ;;  %v568_v3 = vld [vmem:[%s1064_s2 + $0x70] sm:$0xff]  ;;  %v567_v4 = vld [vmem:[%s1064_s2 + $0x68] sm:$0xff]  ;;  %v565_v6 = vld [vmem:[%s1064_s2 + $0x58] sm:$0xff] }
  0x1b   :  { %480 = vmatpush.bf16.msra.mxu1 %v866_v21  ;;  %v564_v7 = vld [vmem:[%s1064_s2 + $0x50] sm:$0xff]  ;;  %v563_v8 = vld [vmem:[%s1064_s2 + $0x48] sm:$0xff]  ;;  %v562_v9 = vld [vmem:[%s1064_s2 + $0x40] sm:$0xff] }
  0x1c   :  { %494 = vmatpush.bf16.msra.mxu2 %v874_v22  ;;  %v561_v10 = vld [vmem:[%s1064_s2 + $0x38] sm:$0xff]  ;;  %v560_v11 = vld [vmem:[%s1064_s2 + $0x30] sm:$0xff]  ;;  %v559_v12 = vld [vmem:[%s1064_s2 + $0x28] sm:$0xff] }
  0x1d   :  { %508 = vmatpush.bf16.msra.mxu3 %v882_v23  ;;  %v558_v13 = vld [vmem:[%s1064_s2 + $0x20] sm:$0xff]  ;;  %v557_v14 = vld [vmem:[%s1064_s2 + $0x18] sm:$0xff]  ;;  %v556_v15 = vld [vmem:[%s1064_s2 + $0x10] sm:$0xff] }
  0x1e   :  { %467 = vmatpush.bf16.msra.mxu0 %v857_v24  ;;  %v555_v16 = vld [vmem:[%s1064_s2 + $0x8] sm:$0xff]  ;;  %v554_v17 = vld [vmem:[%s1064_s2] sm:$0xff] }
  0x1f   :  { %481 = vmatpush.bf16.msra.mxu1 %v865_v25  ;;  %v907_v40 = vld [vmem:[%s1065_s3] ss:$0 sm:$0xff] }
  0x20   :  { %495 = vmatpush.bf16.msra.mxu2 %v873_v26 }
  0x21   :  { %509 = vmatpush.bf16.msra.mxu3 %v881_v27 }
  0x22   :  { %468 = vmatpush.bf16.msra.mxu0 %v856_v28 }
  0x23   :  { %482 = vmatpush.bf16.msra.mxu1 %v864_v29 }
  0x24   :  { %496 = vmatpush.bf16.msra.mxu2 %v872_v30 }
  0x25   :  { %510 = vmatpush.bf16.msra.mxu3 %v880_v39  ;;  %469 = vmatmul.bf16.vlgmr.msra.gmra.mxu0 %v637_v42 }
  0x26   :  { %517 = vmatpush.bf16.msrb.mxu0 %v895_v31  ;;  %483 = vmatmul.bf16.vlgmr.msra.gmra.mxu1 %v641_v43 }
  0x27   :  { %531 = vmatpush.bf16.msrb.mxu1 %v903_v36  ;;  %497 = vmatmul.bf16.vlgmr.msra.gmra.mxu2 %v645_v44 }
  0x28   :  { %511 = vmatmul.bf16.vlgmr.msra.gmra.mxu3 %v649_v46  ;;  %574 = vmatpush.msrb.mxu2 %v569_v48 }
  0x2a   :  { %518 = vmatpush.bf16.msrb.mxu0 %v894_v45  ;;  %575 = vmatpush.msrb.mxu2 %v568_v3 }
  0x2b   :  { %532 = vmatpush.bf16.msrb.mxu1 %v902_v47 }
  0x2c   :  { %576 = vmatpush.msrb.mxu2 %v567_v4 }
  0x2e   :  { %519 = vmatpush.bf16.msrb.mxu0 %v893_v49  ;;  %577 = vmatpush.msrb.mxu2 %v566_v5 }
  0x2f   :  { %533 = vmatpush.bf16.msrb.mxu1 %v901_v50 }
  0x30   :  { %578 = vmatpush.msrb.mxu2 %v565_v6 }
  0x32   :  { %520 = vmatpush.bf16.msrb.mxu0 %v892_v51  ;;  %579 = vmatpush.msrb.mxu2 %v564_v7 }
  0x33   :  { %534 = vmatpush.bf16.msrb.mxu1 %v900_v52 }
  0x34   :  { %580 = vmatpush.msrb.mxu2 %v563_v8 }
  0x36   :  { %521 = vmatpush.bf16.msrb.mxu0 %v891_v53  ;;  %581 = vmatpush.msrb.mxu2 %v562_v9 }
  0x37   :  { %535 = vmatpush.bf16.msrb.mxu1 %v899_v54 }
  0x38   :  { %582 = vmatpush.msrb.mxu2 %v561_v10 }
  0x3a   :  { %522 = vmatpush.bf16.msrb.mxu0 %v890_v55  ;;  %583 = vmatpush.msrb.mxu2 %v560_v11 }
  0x3b   :  { %536 = vmatpush.bf16.msrb.mxu1 %v898_v56 }
  0x3c   :  { %584 = vmatpush.msrb.mxu2 %v559_v12 }
  0x3e   :  { %523 = vmatpush.bf16.msrb.mxu0 %v889_v57  ;;  %585 = vmatpush.msrb.mxu2 %v558_v13 }
  0x3f   :  { %537 = vmatpush.bf16.msrb.mxu1 %v897_v58 }
  0x40   :  { %586 = vmatpush.msrb.mxu2 %v557_v14 }
  0x42   :  { %524 = vmatpush.bf16.msrb.mxu0 %v888_v59  ;;  %587 = vmatpush.msrb.mxu2 %v556_v15 }
  0x43   :  { %538 = vmatpush.bf16.msrb.mxu1 %v896_v62 }
  0x44   :  { %588 = vmatpush.msrb.mxu2 %v555_v16 }
  0x45   :  { %525 = vmatmul.bf16.vlgmr.msrb.gmra.mxu0 %v653_v1 }
  0x46   :  { %539 = vmatmul.bf16.vlgmr.msrb.gmra.mxu1 %v657_v2  ;;  %589 = vmatpush.msrb.mxu2 %v554_v17 }
  0xa2   :  { %v470_v18 = vpop.f32.mrf.mxu0 }
  0xa3   :  { %v484_v19 = vpop.f32.mrf.mxu1 }
  0xa4   :  { %v485_v21 = vadd.f32 %v484_v19, %v470_v18 }
  0xaa   :  { %v498_v20 = vpop.f32.mrf.mxu2  ;;  %v472_v22 = vpop.f32.mrf.mxu0 }
  0xab   :  { %v486_v23 = vpop.f32.mrf.mxu1  ;;  %v512_v24 = vpop.f32.mrf.mxu3  ;;  %v499_v25 = vadd.f32 %v498_v20, %v485_v21 }
  0xac   :  { %v487_v27 = vadd.f32 %v486_v23, %v472_v22 }
  0xad   :  { %v513_v26 = vadd.f32 %v512_v24, %v499_v25 }
  0xb2   :  { %v500_v28 = vpop.f32.mrf.mxu2 }
  0xb3   :  { %v501_v32 = vadd.f32 %v500_v28, %v487_v27  ;;  %v514_v34 = vpop.f32.mrf.mxu3 }
  0xb5   :  { %v515_v35 = vadd.f32 %v514_v34, %v501_v32 }
  0xc2   :  { %v526_v29 = vpop.f32.mrf.mxu0 }
  0xc3   :  { %v527_v30 = vadd.f32 %v526_v29, %v513_v26  ;;  %v540_v31 = vpop.f32.mrf.mxu1 }
  0xc5   :  { %v541_v33 = vadd.f32 %v540_v31, %v527_v30 }
  0xc7   :  { %590 = vmatmul.f32.vlgmr.msrb.gmra.mxu2 %v541_v33 }
  0xca   :  { %v528_v36 = vpop.f32.mrf.mxu0 }
  0xcb   :  { %v529_v37 = vadd.f32 %v528_v36, %v515_v35  ;;  %v542_v38 = vpop.f32.mrf.mxu1 }
  0xcd   :  { %v543_v39 = vadd.f32 %v542_v38, %v529_v37 }
  0xcf   :  { %593 = vmatmul.f32.gmra.mxu2 %v543_v39 }
 0x14a   :  { %v591_v41 = vpop.f32.mrf.mxu2 }
 0x14b   :  { %v592_v42 = vadd.f32 %v907_v40, %v591_v41 }
 0x14d   :  { %v597_v43 = vmul.f32 %v592_v42, %v592_v42 }
 0x14f   :  { %599 = vadd.xlane.f32.xlu0 %v597_v43 }
 0x152   :  { %v594_v44 = vpop.f32.mrf.mxu2 }
 0x153   :  { %v595_v45 = vadd.f32 %v907_v40, %v594_v44 }
 0x155   :  { %v598_v46 = vmul.f32 %v595_v45, %v595_v45 }
 0x157   :  { %601 = vadd.xlane.f32.xlu0 %v598_v46 }
 0x1c2   :  { %v600_v47 = vpop.xlane.xlu0 %599 }
 0x1c3   :  { %v603_v48 = vmax.f32 %v600_v47, 1e-24 }
 0x1c5   :  { %908 = vrsqrt.f32 %v603_v48  ;;  %vm611_vm1 = vweird.f32 %v603_v48 }
 0x1ca   :  { %v602_v49 = vpop.xlane.xlu0 %601 }
 0x1cb   :  { %v909_v50 = vpop.eup %908  ;;  %v604_v51 = vmax.f32 %v602_v49, 1e-24 }
 0x1cc   :  { %v606_v52 = vmul.f32 %v909_v50, %v603_v48  ;;  %vm612_vm0 = vweird.f32 %v909_v50 }
 0x1cd   :  { %910 = vrsqrt.f32 %v604_v51  ;;  %vm613_vm2 = vmor %vm611_vm1, %vm612_vm0  ;;  %vm621_vm4 = vweird.f32 %v604_v51 }
 0x1ce   :  { %v607_v53 = vmul.f32 %v909_v50, %v606_v52 }
 0x1d0   :  { %v608_v54 = vmul.f32 0.5, %v607_v53 }
 0x1d2   :  { %v609_v55 = vsub.f32 1.5, %v608_v54 }
 0x1d3   :  { %v911_v56 = vpop.eup %910 }
 0x1d4   :  { %v610_v57 = vmul.f32 %v909_v50, %v609_v55  ;;  %v616_v58 = vmul.f32 %v911_v56, %v604_v51  ;;  %vm622_vm3 = vweird.f32 %v911_v56 }
 0x1d5   :  { %vm623_vm5 = vmor %vm621_vm4, %vm622_vm3 }
 0x1d6   :  { %v614_v59 = vsel %vm613_vm2, %v909_v50, %v610_v57  ;;  %v617_v60 = vmul.f32 %v911_v56, %v616_v58 }
 0x1d7   :  { %v625_v61 = vmul.f32 %v614_v59, %v592_v42 }
 0x1d8   :  { %v618_v62 = vmul.f32 0.5, %v617_v60 }
 0x1d9   :  { %627 = vst [vmem:[%s1066_s4] sm:$0xff] %v625_v61 }
 0x1da   :  { %v619_v63 = vsub.f32 1.5, %v618_v62 }
 0x1dc   :  { %v620_v0 = vmul.f32 %v911_v56, %v619_v63 }
 0x1de   :  { %v624_v1 = vsel %vm623_vm5, %v911_v56, %v620_v0 }
 0x1df   :  { %v626_v2 = vmul.f32 %v624_v1, %v595_v45 }
 0x1e1   :  { %628 = vst [vmem:[%s1066_s4 + $0x8] sm:$0xff] %v626_v2 }
 0x1e2   :  { %633 = vsyncpa [#allocation4], 1 }

</bundles_post_ra>
